<compile_context>
chip_gen: v6e
topology: v6e:2x2x1
jax: 0.10.0
libtpu: 0.0.40
codegen_flags: <defaults>
</compile_context>

<pallas_src>
import functools

import jax
import jax.numpy as jnp
from jax import lax
from jax.experimental import pallas as pl
from jax.experimental.pallas import tpu as pltpu


def _fused_mha_kernel(x_ref, wqkv_ref, wproj_ref, b_ref, o_ref, *,
                      n_heads: int, head_size: int, batch: int, seq: int):
    # x_ref:    (B*T, C)       all batch elements folded into the matmul M dim
    # wqkv_ref: (C, 3*H*Dh)    [Wq | Wk | Wv], head-major columns (model dtype)
    # wproj_ref:(H*Dh, C)      output projection, pre-transposed (model dtype)
    # b_ref:    (1, C)         projection bias (f32)
    # o_ref:    (B*T, C)
    H, Dh, B, T = n_heads, head_size, batch, seq
    HDh = H * Dh
    C = o_ref.shape[-1]

    x = x_ref[...]
    cdtype = x.dtype                     # model compute dtype for MXU operands

    # --- ONE fused QKV projection over all B*T rows (f32 accumulation) ---
    qkv = jnp.dot(x, wqkv_ref[...],
                  preferred_element_type=jnp.float32)      # (B*T, 3*H*Dh) f32
    # MXU operands for the downstream dots go back to the model dtype
    # (single-pass bf16 when the caller runs bf16; identity for f32).
    qkv = qkv.astype(cdtype)

    # --- causal mask: built once, reused for every (batch, head) ---
    row = lax.broadcasted_iota(jnp.int32, (T, T), 0)
    col = lax.broadcasted_iota(jnp.int32, (T, T), 1)
    causal = col <= row
    neg_inf = jnp.float32(-jnp.inf)
    scale = jnp.float32(Dh ** -0.5)

    # Bias broadcast hoisted out of the loops (JAX does not CSE broadcasts).
    bias = jnp.broadcast_to(b_ref[...].astype(jnp.float32), (T, C))

    # --- per-(batch, head) attention; output projection accumulated per head
    # into a single f32 (T, C) buffer -> no lane-direction concat.  B and H
    # are static Python ints, so these loops unroll into static slices. ---
    for b in range(B):
        r0, r1 = b * T, (b + 1) * T
        y = bias                                            # (T, C) f32
        for h in range(H):
            q = qkv[r0:r1, 0 * HDh + h * Dh: 0 * HDh + (h + 1) * Dh]
            k = qkv[r0:r1, 1 * HDh + h * Dh: 1 * HDh + (h + 1) * Dh]
            v = qkv[r0:r1, 2 * HDh + h * Dh: 2 * HDh + (h + 1) * Dh]
            # scores = q @ k^T (contract head dims; no explicit transpose)
            s = lax.dot_general(q, k, (((1,), (1,)), ((), ())),
                                preferred_element_type=jnp.float32) * scale
            s = jnp.where(causal, s, neg_inf)
            s = s - jnp.max(s, axis=-1, keepdims=True)
            p = jnp.exp(s)
            # Exact divide (negligible cost here) keeps bit-closeness to the
            # PyTorch module; use pl.reciprocal(..., approx=True) when scaled.
            p = p / jnp.sum(p, axis=-1, keepdims=True)
            # TODO(synk): attention dropout is an eval-mode identity (no RNG).
            head_out = jnp.dot(p.astype(cdtype), v,
                               preferred_element_type=jnp.float32)  # (T, Dh)
            # Fused per-head slice of the output projection, f32 accumulation.
            y = y + jnp.dot(head_out.astype(cdtype),
                            wproj_ref[h * Dh:(h + 1) * Dh, :],
                            preferred_element_type=jnp.float32)
        # TODO(synk): output dropout is an eval-mode identity (no RNG).
        o_ref[pl.ds(r0, T), :] = y.astype(o_ref.dtype)


def multi_head_attention(x, wq, wk, wv, w_proj, b_proj):
    """x: (B,T,C); wq/wk/wv: (H,C,Dh); w_proj: (H*Dh,C); b_proj: (1,C)."""
    B, T, C = x.shape
    H, _, Dh = wq.shape
    HDh = H * Dh
    BT = B * T

    cdtype = x.dtype

    def _flat(w):  # (H, C, Dh) -> (C, H*Dh), head-major columns
        return jnp.transpose(w, (1, 0, 2)).reshape(C, HDh)

    # Stack all projection weights once: [Wq | Wk | Wv] -> (C, 3*H*Dh), cast to
    # the activation dtype so every MXU matmul is single-pass in model dtype.
    wqkv = jnp.concatenate([_flat(wq), _flat(wk), _flat(wv)],
                           axis=-1).astype(cdtype)
    w_proj = w_proj.astype(cdtype)
    b_proj = b_proj.astype(jnp.float32)      # bias joins the f32 accumulator

    # Fold the batch into the matmul M dimension: one grid-free kernel call.
    x2d = x.reshape(BT, C)

    flops = int(2 * BT * C * 3 * HDh                # fused QKV matmul
                + B * H * 2 * (2 * T * T * Dh)      # scores + PV per (b, h)
                + B * H * 2 * T * Dh * C)           # per-head projection acc.
    transcendentals = int(B * H * T * T)            # exp in softmax
    bytes_accessed = int(x2d.size * x2d.dtype.itemsize
                         + wqkv.size * wqkv.dtype.itemsize
                         + w_proj.size * w_proj.dtype.itemsize
                         + b_proj.size * b_proj.dtype.itemsize
                         + BT * C * x.dtype.itemsize)

    kernel = functools.partial(_fused_mha_kernel, n_heads=H, head_size=Dh,
                               batch=B, seq=T)

    out2d = pl.pallas_call(
        kernel,
        out_shape=jax.ShapeDtypeStruct((BT, C), x.dtype),
        # Grid-free call: whole (tiny) operands live in VMEM for the single step.
        in_specs=[
            pl.BlockSpec(memory_space=pltpu.MemorySpace.VMEM),
            pl.BlockSpec(memory_space=pltpu.MemorySpace.VMEM),
            pl.BlockSpec(memory_space=pltpu.MemorySpace.VMEM),
            pl.BlockSpec(memory_space=pltpu.MemorySpace.VMEM),
        ],
        out_specs=pl.BlockSpec(memory_space=pltpu.MemorySpace.VMEM),
        cost_estimate=pl.CostEstimate(
            flops=flops,
            transcendentals=transcendentals,
            bytes_accessed=bytes_accessed),
    )(x2d, wqkv, w_proj, b_proj)

    return out2d.reshape(B, T, C)


def _reference(x, wq, wk, wv, w_proj, b_proj):
    """Pure-JAX reference for correctness checking."""
    B, T, C = x.shape
    H, _, Dh = wq.shape
    q = jnp.einsum("btc,hcd->bhtd", x, wq)
    k = jnp.einsum("btc,hcd->bhtd", x, wk)
    v = jnp.einsum("btc,hcd->bhtd", x, wv)
    scores = jnp.einsum("bhtd,bhsd->bhts", q, k) * (Dh ** -0.5)
    mask = jnp.tril(jnp.ones((T, T), dtype=bool))
    scores = jnp.where(mask[None, None], scores, -jnp.inf)
    p = jax.nn.softmax(scores, axis=-1)
    o = jnp.einsum("bhts,bhsd->bhtd", p, v)
    o = jnp.transpose(o, (0, 2, 1, 3)).reshape(B, T, H * Dh)
    return o @ w_proj + b_proj


if __name__ == "__main__":
    # Shapes implied by the module: block_size (=seq) T=8, embedding_dim=32,
    # n_heads=4, head_size=8 (n_heads*head_size == embedding_dim), batch=2.
    B, T, C, H, Dh = 2, 8, 32, 4, 8

    key = jax.random.PRNGKey(0)
    k_x, k_q, k_k, k_v, k_p, k_b = jax.random.split(key, 6)

    x = jax.random.normal(k_x, (B, T, C), dtype=jnp.float32)
    # Per-head projection weights stored as (H, C, Dh) so y = x @ W (== x @ W_torch^T).
    wq = 0.05 * jax.random.normal(k_q, (H, C, Dh), dtype=jnp.float32)
    wk = 0.05 * jax.random.normal(k_k, (H, C, Dh), dtype=jnp.float32)
    wv = 0.05 * jax.random.normal(k_v, (H, C, Dh), dtype=jnp.float32)
    # Output projection: nn.Linear(H*Dh, C) -> stored pre-transposed as (H*Dh, C).
    w_proj = 0.05 * jax.random.normal(k_p, (H * Dh, C), dtype=jnp.float32)
    b_proj = 0.05 * jax.random.normal(k_b, (1, C), dtype=jnp.float32)

    out = multi_head_attention(x, wq, wk, wv, w_proj, b_proj)
    out = jax.block_until_ready(out)

    ref = _reference(x, wq, wk, wv, w_proj, b_proj)
    assert out.shape == (B, T, C)
    assert jnp.allclose(out, ref, atol=1e-4, rtol=1e-4), "mismatch vs JAX reference"

    print("KERNEL_OK")
</pallas_src>

<mosaic_0001>
module attributes {stable_mosaic.version = 11 : i64} {
  func.func @_fused_mha_kernel(%arg0: memref<16x32xf32, #tpu.memory_space<vmem>>, %arg1: memref<32x96xf32, #tpu.memory_space<vmem>>, %arg2: memref<32x32xf32, #tpu.memory_space<vmem>>, %arg3: memref<1x32xf32, #tpu.memory_space<vmem>>, %arg4: memref<16x32xf32, #tpu.memory_space<vmem>>) attributes {dimension_semantics = [], scalar_prefetch = 0 : i64, scratch_operands = 0 : i64, tpu.core_type = #tpu.core_type<tc>} {
    %c0 = arith.constant 0 : index
    %c0_0 = arith.constant 0 : index
    %0 = vector.load %arg0[%c0, %c0_0] : memref<16x32xf32, #tpu.memory_space<vmem>>, vector<16x32xf32>
    %c0_1 = arith.constant 0 : index
    %c0_2 = arith.constant 0 : index
    %1 = vector.load %arg1[%c0_1, %c0_2] : memref<32x96xf32, #tpu.memory_space<vmem>>, vector<32x96xf32>
    %cst = arith.constant dense<0.000000e+00> : vector<16x96xf32>
    %2 = tpu.matmul %0, %1, %cst {dimension_numbers = #tpu.dot_dimension_numbers<[1], [0], [0], [1], [0, 0, 1, 1], [], []>} : vector<16x32xf32>, vector<32x96xf32>, vector<16x96xf32> -> vector<16x96xf32>
    %3 = tpu.iota {dimensions = array<i32: 0>} : vector<8x8xi32>
    %4 = tpu.iota {dimensions = array<i32: 1>} : vector<8x8xi32>
    %5 = arith.cmpi sle, %4, %3 : vector<8x8xi32>
    %c0_3 = arith.constant 0 : index
    %c0_4 = arith.constant 0 : index
    %6 = vector.load %arg3[%c0_3, %c0_4] : memref<1x32xf32, #tpu.memory_space<vmem>>, vector<1x32xf32>
    %7 = vector.shape_cast %6 : vector<1x32xf32> to vector<1x32xf32>
    %8 = vector.broadcast %7 : vector<1x32xf32> to vector<8x32xf32>
    %9 = vector.extract_strided_slice %2 {offsets = [0, 0], sizes = [8, 8], strides = [1, 1]} : vector<16x96xf32> to vector<8x8xf32>
    %10 = vector.extract_strided_slice %2 {offsets = [0, 32], sizes = [8, 8], strides = [1, 1]} : vector<16x96xf32> to vector<8x8xf32>
    %11 = vector.extract_strided_slice %2 {offsets = [0, 64], sizes = [8, 8], strides = [1, 1]} : vector<16x96xf32> to vector<8x8xf32>
    %cst_5 = arith.constant dense<0.000000e+00> : vector<8x8xf32>
    %12 = tpu.matmul %9, %10, %cst_5 {dimension_numbers = #tpu.dot_dimension_numbers<[1], [1], [0], [0], [0, 0, 1, 0], [], []>} : vector<8x8xf32>, vector<8x8xf32>, vector<8x8xf32> -> vector<8x8xf32>
    %cst_6 = arith.constant 0.353553385 : f32
    %13 = vector.broadcast %cst_6 : f32 to vector<8x8xf32>
    %14 = arith.mulf %12, %13 : vector<8x8xf32>
    %cst_7 = arith.constant 0xFF800000 : f32
    %15 = vector.broadcast %cst_7 : f32 to vector<8x8xf32>
    %16 = arith.select %5, %14, %15 : vector<8x8xi1>, vector<8x8xf32>
    %cst_8 = arith.constant dense<0xFF800000> : vector<8xf32>
    %17 = vector.multi_reduction <maximumf>, %16, %cst_8 [1] : vector<8x8xf32> to vector<8xf32>
    %18 = vector.shape_cast %17 : vector<8xf32> to vector<8x1xf32>
    %19 = vector.broadcast %18 : vector<8x1xf32> to vector<8x8xf32>
    %20 = arith.subf %16, %19 : vector<8x8xf32>
    %21 = math.exp %20 : vector<8x8xf32>
    %cst_9 = arith.constant dense<0.000000e+00> : vector<8xf32>
    %22 = vector.multi_reduction <add>, %21, %cst_9 [1] : vector<8x8xf32> to vector<8xf32>
    %23 = vector.shape_cast %22 : vector<8xf32> to vector<8x1xf32>
    %24 = vector.broadcast %23 : vector<8x1xf32> to vector<8x8xf32>
    %25 = arith.divf %21, %24 : vector<8x8xf32>
    %cst_10 = arith.constant dense<0.000000e+00> : vector<8x8xf32>
    %26 = tpu.matmul %25, %11, %cst_10 {dimension_numbers = #tpu.dot_dimension_numbers<[1], [0], [0], [1], [0, 0, 1, 1], [], []>} : vector<8x8xf32>, vector<8x8xf32>, vector<8x8xf32> -> vector<8x8xf32>
    %c0_11 = arith.constant 0 : index
    %c0_12 = arith.constant 0 : index
    %27 = vector.load %arg2[%c0_11, %c0_12] : memref<32x32xf32, #tpu.memory_space<vmem>>, vector<8x32xf32>
    %cst_13 = arith.constant dense<0.000000e+00> : vector<8x32xf32>
    %28 = tpu.matmul %26, %27, %cst_13 {dimension_numbers = #tpu.dot_dimension_numbers<[1], [0], [0], [1], [0, 0, 1, 1], [], []>} : vector<8x8xf32>, vector<8x32xf32>, vector<8x32xf32> -> vector<8x32xf32>
    %29 = arith.addf %8, %28 : vector<8x32xf32>
    %30 = vector.extract_strided_slice %2 {offsets = [0, 8], sizes = [8, 8], strides = [1, 1]} : vector<16x96xf32> to vector<8x8xf32>
    %31 = vector.extract_strided_slice %2 {offsets = [0, 40], sizes = [8, 8], strides = [1, 1]} : vector<16x96xf32> to vector<8x8xf32>
    %32 = vector.extract_strided_slice %2 {offsets = [0, 72], sizes = [8, 8], strides = [1, 1]} : vector<16x96xf32> to vector<8x8xf32>
    %cst_14 = arith.constant dense<0.000000e+00> : vector<8x8xf32>
    %33 = tpu.matmul %30, %31, %cst_14 {dimension_numbers = #tpu.dot_dimension_numbers<[1], [1], [0], [0], [0, 0, 1, 0], [], []>} : vector<8x8xf32>, vector<8x8xf32>, vector<8x8xf32> -> vector<8x8xf32>
    %cst_15 = arith.constant 0.353553385 : f32
    %34 = vector.broadcast %cst_15 : f32 to vector<8x8xf32>
    %35 = arith.mulf %33, %34 : vector<8x8xf32>
    %cst_16 = arith.constant 0xFF800000 : f32
    %36 = vector.broadcast %cst_16 : f32 to vector<8x8xf32>
    %37 = arith.select %5, %35, %36 : vector<8x8xi1>, vector<8x8xf32>
    %cst_17 = arith.constant dense<0xFF800000> : vector<8xf32>
    %38 = vector.multi_reduction <maximumf>, %37, %cst_17 [1] : vector<8x8xf32> to vector<8xf32>
    %39 = vector.shape_cast %38 : vector<8xf32> to vector<8x1xf32>
    %40 = vector.broadcast %39 : vector<8x1xf32> to vector<8x8xf32>
    %41 = arith.subf %37, %40 : vector<8x8xf32>
    %42 = math.exp %41 : vector<8x8xf32>
    %cst_18 = arith.constant dense<0.000000e+00> : vector<8xf32>
    %43 = vector.multi_reduction <add>, %42, %cst_18 [1] : vector<8x8xf32> to vector<8xf32>
    %44 = vector.shape_cast %43 : vector<8xf32> to vector<8x1xf32>
    %45 = vector.broadcast %44 : vector<8x1xf32> to vector<8x8xf32>
    %46 = arith.divf %42, %45 : vector<8x8xf32>
    %cst_19 = arith.constant dense<0.000000e+00> : vector<8x8xf32>
    %47 = tpu.matmul %46, %32, %cst_19 {dimension_numbers = #tpu.dot_dimension_numbers<[1], [0], [0], [1], [0, 0, 1, 1], [], []>} : vector<8x8xf32>, vector<8x8xf32>, vector<8x8xf32> -> vector<8x8xf32>
    %c8 = arith.constant 8 : index
    %c0_20 = arith.constant 0 : index
    %48 = vector.load %arg2[%c8, %c0_20] : memref<32x32xf32, #tpu.memory_space<vmem>>, vector<8x32xf32>
    %cst_21 = arith.constant dense<0.000000e+00> : vector<8x32xf32>
    %49 = tpu.matmul %47, %48, %cst_21 {dimension_numbers = #tpu.dot_dimension_numbers<[1], [0], [0], [1], [0, 0, 1, 1], [], []>} : vector<8x8xf32>, vector<8x32xf32>, vector<8x32xf32> -> vector<8x32xf32>
    %50 = arith.addf %29, %49 : vector<8x32xf32>
    %51 = vector.extract_strided_slice %2 {offsets = [0, 16], sizes = [8, 8], strides = [1, 1]} : vector<16x96xf32> to vector<8x8xf32>
    %52 = vector.extract_strided_slice %2 {offsets = [0, 48], sizes = [8, 8], strides = [1, 1]} : vector<16x96xf32> to vector<8x8xf32>
    %53 = vector.extract_strided_slice %2 {offsets = [0, 80], sizes = [8, 8], strides = [1, 1]} : vector<16x96xf32> to vector<8x8xf32>
    %cst_22 = arith.constant dense<0.000000e+00> : vector<8x8xf32>
    %54 = tpu.matmul %51, %52, %cst_22 {dimension_numbers = #tpu.dot_dimension_numbers<[1], [1], [0], [0], [0, 0, 1, 0], [], []>} : vector<8x8xf32>, vector<8x8xf32>, vector<8x8xf32> -> vector<8x8xf32>
    %cst_23 = arith.constant 0.353553385 : f32
    %55 = vector.broadcast %cst_23 : f32 to vector<8x8xf32>
    %56 = arith.mulf %54, %55 : vector<8x8xf32>
    %cst_24 = arith.constant 0xFF800000 : f32
    %57 = vector.broadcast %cst_24 : f32 to vector<8x8xf32>
    %58 = arith.select %5, %56, %57 : vector<8x8xi1>, vector<8x8xf32>
    %cst_25 = arith.constant dense<0xFF800000> : vector<8xf32>
    %59 = vector.multi_reduction <maximumf>, %58, %cst_25 [1] : vector<8x8xf32> to vector<8xf32>
    %60 = vector.shape_cast %59 : vector<8xf32> to vector<8x1xf32>
    %61 = vector.broadcast %60 : vector<8x1xf32> to vector<8x8xf32>
    %62 = arith.subf %58, %61 : vector<8x8xf32>
    %63 = math.exp %62 : vector<8x8xf32>
    %cst_26 = arith.constant dense<0.000000e+00> : vector<8xf32>
    %64 = vector.multi_reduction <add>, %63, %cst_26 [1] : vector<8x8xf32> to vector<8xf32>
    %65 = vector.shape_cast %64 : vector<8xf32> to vector<8x1xf32>
    %66 = vector.broadcast %65 : vector<8x1xf32> to vector<8x8xf32>
    %67 = arith.divf %63, %66 : vector<8x8xf32>
    %cst_27 = arith.constant dense<0.000000e+00> : vector<8x8xf32>
    %68 = tpu.matmul %67, %53, %cst_27 {dimension_numbers = #tpu.dot_dimension_numbers<[1], [0], [0], [1], [0, 0, 1, 1], [], []>} : vector<8x8xf32>, vector<8x8xf32>, vector<8x8xf32> -> vector<8x8xf32>
    %c16 = arith.constant 16 : index
    %c0_28 = arith.constant 0 : index
    %69 = vector.load %arg2[%c16, %c0_28] : memref<32x32xf32, #tpu.memory_space<vmem>>, vector<8x32xf32>
    %cst_29 = arith.constant dense<0.000000e+00> : vector<8x32xf32>
    %70 = tpu.matmul %68, %69, %cst_29 {dimension_numbers = #tpu.dot_dimension_numbers<[1], [0], [0], [1], [0, 0, 1, 1], [], []>} : vector<8x8xf32>, vector<8x32xf32>, vector<8x32xf32> -> vector<8x32xf32>
    %71 = arith.addf %50, %70 : vector<8x32xf32>
    %72 = vector.extract_strided_slice %2 {offsets = [0, 24], sizes = [8, 8], strides = [1, 1]} : vector<16x96xf32> to vector<8x8xf32>
    %73 = vector.extract_strided_slice %2 {offsets = [0, 56], sizes = [8, 8], strides = [1, 1]} : vector<16x96xf32> to vector<8x8xf32>
    %74 = vector.extract_strided_slice %2 {offsets = [0, 88], sizes = [8, 8], strides = [1, 1]} : vector<16x96xf32> to vector<8x8xf32>
    %cst_30 = arith.constant dense<0.000000e+00> : vector<8x8xf32>
    %75 = tpu.matmul %72, %73, %cst_30 {dimension_numbers = #tpu.dot_dimension_numbers<[1], [1], [0], [0], [0, 0, 1, 0], [], []>} : vector<8x8xf32>, vector<8x8xf32>, vector<8x8xf32> -> vector<8x8xf32>
    %cst_31 = arith.constant 0.353553385 : f32
    %76 = vector.broadcast %cst_31 : f32 to vector<8x8xf32>
    %77 = arith.mulf %75, %76 : vector<8x8xf32>
    %cst_32 = arith.constant 0xFF800000 : f32
    %78 = vector.broadcast %cst_32 : f32 to vector<8x8xf32>
    %79 = arith.select %5, %77, %78 : vector<8x8xi1>, vector<8x8xf32>
    %cst_33 = arith.constant dense<0xFF800000> : vector<8xf32>
    %80 = vector.multi_reduction <maximumf>, %79, %cst_33 [1] : vector<8x8xf32> to vector<8xf32>
    %81 = vector.shape_cast %80 : vector<8xf32> to vector<8x1xf32>
    %82 = vector.broadcast %81 : vector<8x1xf32> to vector<8x8xf32>
    %83 = arith.subf %79, %82 : vector<8x8xf32>
    %84 = math.exp %83 : vector<8x8xf32>
    %cst_34 = arith.constant dense<0.000000e+00> : vector<8xf32>
    %85 = vector.multi_reduction <add>, %84, %cst_34 [1] : vector<8x8xf32> to vector<8xf32>
    %86 = vector.shape_cast %85 : vector<8xf32> to vector<8x1xf32>
    %87 = vector.broadcast %86 : vector<8x1xf32> to vector<8x8xf32>
    %88 = arith.divf %84, %87 : vector<8x8xf32>
    %cst_35 = arith.constant dense<0.000000e+00> : vector<8x8xf32>
    %89 = tpu.matmul %88, %74, %cst_35 {dimension_numbers = #tpu.dot_dimension_numbers<[1], [0], [0], [1], [0, 0, 1, 1], [], []>} : vector<8x8xf32>, vector<8x8xf32>, vector<8x8xf32> -> vector<8x8xf32>
    %c24 = arith.constant 24 : index
    %c0_36 = arith.constant 0 : index
    %90 = vector.load %arg2[%c24, %c0_36] : memref<32x32xf32, #tpu.memory_space<vmem>>, vector<8x32xf32>
    %cst_37 = arith.constant dense<0.000000e+00> : vector<8x32xf32>
    %91 = tpu.matmul %89, %90, %cst_37 {dimension_numbers = #tpu.dot_dimension_numbers<[1], [0], [0], [1], [0, 0, 1, 1], [], []>} : vector<8x8xf32>, vector<8x32xf32>, vector<8x32xf32> -> vector<8x32xf32>
    %92 = arith.addf %71, %91 : vector<8x32xf32>
    %c0_38 = arith.constant 0 : index
    %c0_39 = arith.constant 0 : index
    %93 = vector.load %arg4[%c0_38, %c0_39] : memref<16x32xf32, #tpu.memory_space<vmem>>, vector<8x32xf32>
    tpu.vector_store %arg4[%c0_38, %c0_39], %92 {strides = array<i32>} : memref<16x32xf32, #tpu.memory_space<vmem>>, vector<8x32xf32>,
    %94 = vector.extract_strided_slice %2 {offsets = [8, 0], sizes = [8, 8], strides = [1, 1]} : vector<16x96xf32> to vector<8x8xf32>
    %95 = vector.extract_strided_slice %2 {offsets = [8, 32], sizes = [8, 8], strides = [1, 1]} : vector<16x96xf32> to vector<8x8xf32>
    %96 = vector.extract_strided_slice %2 {offsets = [8, 64], sizes = [8, 8], strides = [1, 1]} : vector<16x96xf32> to vector<8x8xf32>
    %cst_40 = arith.constant dense<0.000000e+00> : vector<8x8xf32>
    %97 = tpu.matmul %94, %95, %cst_40 {dimension_numbers = #tpu.dot_dimension_numbers<[1], [1], [0], [0], [0, 0, 1, 0], [], []>} : vector<8x8xf32>, vector<8x8xf32>, vector<8x8xf32> -> vector<8x8xf32>
    %cst_41 = arith.constant 0.353553385 : f32
    %98 = vector.broadcast %cst_41 : f32 to vector<8x8xf32>
    %99 = arith.mulf %97, %98 : vector<8x8xf32>
    %cst_42 = arith.constant 0xFF800000 : f32
    %100 = vector.broadcast %cst_42 : f32 to vector<8x8xf32>
    %101 = arith.select %5, %99, %100 : vector<8x8xi1>, vector<8x8xf32>
    %cst_43 = arith.constant dense<0xFF800000> : vector<8xf32>
    %102 = vector.multi_reduction <maximumf>, %101, %cst_43 [1] : vector<8x8xf32> to vector<8xf32>
    %103 = vector.shape_cast %102 : vector<8xf32> to vector<8x1xf32>
    %104 = vector.broadcast %103 : vector<8x1xf32> to vector<8x8xf32>
    %105 = arith.subf %101, %104 : vector<8x8xf32>
    %106 = math.exp %105 : vector<8x8xf32>
    %cst_44 = arith.constant dense<0.000000e+00> : vector<8xf32>
    %107 = vector.multi_reduction <add>, %106, %cst_44 [1] : vector<8x8xf32> to vector<8xf32>
    %108 = vector.shape_cast %107 : vector<8xf32> to vector<8x1xf32>
    %109 = vector.broadcast %108 : vector<8x1xf32> to vector<8x8xf32>
    %110 = arith.divf %106, %109 : vector<8x8xf32>
    %cst_45 = arith.constant dense<0.000000e+00> : vector<8x8xf32>
    %111 = tpu.matmul %110, %96, %cst_45 {dimension_numbers = #tpu.dot_dimension_numbers<[1], [0], [0], [1], [0, 0, 1, 1], [], []>} : vector<8x8xf32>, vector<8x8xf32>, vector<8x8xf32> -> vector<8x8xf32>
    %c0_46 = arith.constant 0 : index
    %c0_47 = arith.constant 0 : index
    %112 = vector.load %arg2[%c0_46, %c0_47] : memref<32x32xf32, #tpu.memory_space<vmem>>, vector<8x32xf32>
    %cst_48 = arith.constant dense<0.000000e+00> : vector<8x32xf32>
    %113 = tpu.matmul %111, %112, %cst_48 {dimension_numbers = #tpu.dot_dimension_numbers<[1], [0], [0], [1], [0, 0, 1, 1], [], []>} : vector<8x8xf32>, vector<8x32xf32>, vector<8x32xf32> -> vector<8x32xf32>
    %114 = arith.addf %8, %113 : vector<8x32xf32>
    %115 = vector.extract_strided_slice %2 {offsets = [8, 8], sizes = [8, 8], strides = [1, 1]} : vector<16x96xf32> to vector<8x8xf32>
    %116 = vector.extract_strided_slice %2 {offsets = [8, 40], sizes = [8, 8], strides = [1, 1]} : vector<16x96xf32> to vector<8x8xf32>
    %117 = vector.extract_strided_slice %2 {offsets = [8, 72], sizes = [8, 8], strides = [1, 1]} : vector<16x96xf32> to vector<8x8xf32>
    %cst_49 = arith.constant dense<0.000000e+00> : vector<8x8xf32>
    %118 = tpu.matmul %115, %116, %cst_49 {dimension_numbers = #tpu.dot_dimension_numbers<[1], [1], [0], [0], [0, 0, 1, 0], [], []>} : vector<8x8xf32>, vector<8x8xf32>, vector<8x8xf32> -> vector<8x8xf32>
    %cst_50 = arith.constant 0.353553385 : f32
    %119 = vector.broadcast %cst_50 : f32 to vector<8x8xf32>
    %120 = arith.mulf %118, %119 : vector<8x8xf32>
    %cst_51 = arith.constant 0xFF800000 : f32
    %121 = vector.broadcast %cst_51 : f32 to vector<8x8xf32>
    %122 = arith.select %5, %120, %121 : vector<8x8xi1>, vector<8x8xf32>
    %cst_52 = arith.constant dense<0xFF800000> : vector<8xf32>
    %123 = vector.multi_reduction <maximumf>, %122, %cst_52 [1] : vector<8x8xf32> to vector<8xf32>
    %124 = vector.shape_cast %123 : vector<8xf32> to vector<8x1xf32>
    %125 = vector.broadcast %124 : vector<8x1xf32> to vector<8x8xf32>
    %126 = arith.subf %122, %125 : vector<8x8xf32>
    %127 = math.exp %126 : vector<8x8xf32>
    %cst_53 = arith.constant dense<0.000000e+00> : vector<8xf32>
    %128 = vector.multi_reduction <add>, %127, %cst_53 [1] : vector<8x8xf32> to vector<8xf32>
    %129 = vector.shape_cast %128 : vector<8xf32> to vector<8x1xf32>
    %130 = vector.broadcast %129 : vector<8x1xf32> to vector<8x8xf32>
    %131 = arith.divf %127, %130 : vector<8x8xf32>
    %cst_54 = arith.constant dense<0.000000e+00> : vector<8x8xf32>
    %132 = tpu.matmul %131, %117, %cst_54 {dimension_numbers = #tpu.dot_dimension_numbers<[1], [0], [0], [1], [0, 0, 1, 1], [], []>} : vector<8x8xf32>, vector<8x8xf32>, vector<8x8xf32> -> vector<8x8xf32>
    %c8_55 = arith.constant 8 : index
    %c0_56 = arith.constant 0 : index
    %133 = vector.load %arg2[%c8_55, %c0_56] : memref<32x32xf32, #tpu.memory_space<vmem>>, vector<8x32xf32>
    %cst_57 = arith.constant dense<0.000000e+00> : vector<8x32xf32>
    %134 = tpu.matmul %132, %133, %cst_57 {dimension_numbers = #tpu.dot_dimension_numbers<[1], [0], [0], [1], [0, 0, 1, 1], [], []>} : vector<8x8xf32>, vector<8x32xf32>, vector<8x32xf32> -> vector<8x32xf32>
    %135 = arith.addf %114, %134 : vector<8x32xf32>
    %136 = vector.extract_strided_slice %2 {offsets = [8, 16], sizes = [8, 8], strides = [1, 1]} : vector<16x96xf32> to vector<8x8xf32>
    %137 = vector.extract_strided_slice %2 {offsets = [8, 48], sizes = [8, 8], strides = [1, 1]} : vector<16x96xf32> to vector<8x8xf32>
    %138 = vector.extract_strided_slice %2 {offsets = [8, 80], sizes = [8, 8], strides = [1, 1]} : vector<16x96xf32> to vector<8x8xf32>
    %cst_58 = arith.constant dense<0.000000e+00> : vector<8x8xf32>
    %139 = tpu.matmul %136, %137, %cst_58 {dimension_numbers = #tpu.dot_dimension_numbers<[1], [1], [0], [0], [0, 0, 1, 0], [], []>} : vector<8x8xf32>, vector<8x8xf32>, vector<8x8xf32> -> vector<8x8xf32>
    %cst_59 = arith.constant 0.353553385 : f32
    %140 = vector.broadcast %cst_59 : f32 to vector<8x8xf32>
    %141 = arith.mulf %139, %140 : vector<8x8xf32>
    %cst_60 = arith.constant 0xFF800000 : f32
    %142 = vector.broadcast %cst_60 : f32 to vector<8x8xf32>
    %143 = arith.select %5, %141, %142 : vector<8x8xi1>, vector<8x8xf32>
    %cst_61 = arith.constant dense<0xFF800000> : vector<8xf32>
    %144 = vector.multi_reduction <maximumf>, %143, %cst_61 [1] : vector<8x8xf32> to vector<8xf32>
    %145 = vector.shape_cast %144 : vector<8xf32> to vector<8x1xf32>
    %146 = vector.broadcast %145 : vector<8x1xf32> to vector<8x8xf32>
    %147 = arith.subf %143, %146 : vector<8x8xf32>
    %148 = math.exp %147 : vector<8x8xf32>
    %cst_62 = arith.constant dense<0.000000e+00> : vector<8xf32>
    %149 = vector.multi_reduction <add>, %148, %cst_62 [1] : vector<8x8xf32> to vector<8xf32>
    %150 = vector.shape_cast %149 : vector<8xf32> to vector<8x1xf32>
    %151 = vector.broadcast %150 : vector<8x1xf32> to vector<8x8xf32>
    %152 = arith.divf %148, %151 : vector<8x8xf32>
    %cst_63 = arith.constant dense<0.000000e+00> : vector<8x8xf32>
    %153 = tpu.matmul %152, %138, %cst_63 {dimension_numbers = #tpu.dot_dimension_numbers<[1], [0], [0], [1], [0, 0, 1, 1], [], []>} : vector<8x8xf32>, vector<8x8xf32>, vector<8x8xf32> -> vector<8x8xf32>
    %c16_64 = arith.constant 16 : index
    %c0_65 = arith.constant 0 : index
    %154 = vector.load %arg2[%c16_64, %c0_65] : memref<32x32xf32, #tpu.memory_space<vmem>>, vector<8x32xf32>
    %cst_66 = arith.constant dense<0.000000e+00> : vector<8x32xf32>
    %155 = tpu.matmul %153, %154, %cst_66 {dimension_numbers = #tpu.dot_dimension_numbers<[1], [0], [0], [1], [0, 0, 1, 1], [], []>} : vector<8x8xf32>, vector<8x32xf32>, vector<8x32xf32> -> vector<8x32xf32>
    %156 = arith.addf %135, %155 : vector<8x32xf32>
    %157 = vector.extract_strided_slice %2 {offsets = [8, 24], sizes = [8, 8], strides = [1, 1]} : vector<16x96xf32> to vector<8x8xf32>
    %158 = vector.extract_strided_slice %2 {offsets = [8, 56], sizes = [8, 8], strides = [1, 1]} : vector<16x96xf32> to vector<8x8xf32>
    %159 = vector.extract_strided_slice %2 {offsets = [8, 88], sizes = [8, 8], strides = [1, 1]} : vector<16x96xf32> to vector<8x8xf32>
    %cst_67 = arith.constant dense<0.000000e+00> : vector<8x8xf32>
    %160 = tpu.matmul %157, %158, %cst_67 {dimension_numbers = #tpu.dot_dimension_numbers<[1], [1], [0], [0], [0, 0, 1, 0], [], []>} : vector<8x8xf32>, vector<8x8xf32>, vector<8x8xf32> -> vector<8x8xf32>
    %cst_68 = arith.constant 0.353553385 : f32
    %161 = vector.broadcast %cst_68 : f32 to vector<8x8xf32>
    %162 = arith.mulf %160, %161 : vector<8x8xf32>
    %cst_69 = arith.constant 0xFF800000 : f32
    %163 = vector.broadcast %cst_69 : f32 to vector<8x8xf32>
    %164 = arith.select %5, %162, %163 : vector<8x8xi1>, vector<8x8xf32>
    %cst_70 = arith.constant dense<0xFF800000> : vector<8xf32>
    %165 = vector.multi_reduction <maximumf>, %164, %cst_70 [1] : vector<8x8xf32> to vector<8xf32>
    %166 = vector.shape_cast %165 : vector<8xf32> to vector<8x1xf32>
    %167 = vector.broadcast %166 : vector<8x1xf32> to vector<8x8xf32>
    %168 = arith.subf %164, %167 : vector<8x8xf32>
    %169 = math.exp %168 : vector<8x8xf32>
    %cst_71 = arith.constant dense<0.000000e+00> : vector<8xf32>
    %170 = vector.multi_reduction <add>, %169, %cst_71 [1] : vector<8x8xf32> to vector<8xf32>
    %171 = vector.shape_cast %170 : vector<8xf32> to vector<8x1xf32>
    %172 = vector.broadcast %171 : vector<8x1xf32> to vector<8x8xf32>
    %173 = arith.divf %169, %172 : vector<8x8xf32>
    %cst_72 = arith.constant dense<0.000000e+00> : vector<8x8xf32>
    %174 = tpu.matmul %173, %159, %cst_72 {dimension_numbers = #tpu.dot_dimension_numbers<[1], [0], [0], [1], [0, 0, 1, 1], [], []>} : vector<8x8xf32>, vector<8x8xf32>, vector<8x8xf32> -> vector<8x8xf32>
    %c24_73 = arith.constant 24 : index
    %c0_74 = arith.constant 0 : index
    %175 = vector.load %arg2[%c24_73, %c0_74] : memref<32x32xf32, #tpu.memory_space<vmem>>, vector<8x32xf32>
    %cst_75 = arith.constant dense<0.000000e+00> : vector<8x32xf32>
    %176 = tpu.matmul %174, %175, %cst_75 {dimension_numbers = #tpu.dot_dimension_numbers<[1], [0], [0], [1], [0, 0, 1, 1], [], []>} : vector<8x8xf32>, vector<8x32xf32>, vector<8x32xf32> -> vector<8x32xf32>
    %177 = arith.addf %156, %176 : vector<8x32xf32>
    %c8_76 = arith.constant 8 : index
    %c0_77 = arith.constant 0 : index
    %178 = vector.load %arg4[%c8_76, %c0_77] : memref<16x32xf32, #tpu.memory_space<vmem>>, vector<8x32xf32>
    tpu.vector_store %arg4[%c8_76, %c0_77], %177 {strides = array<i32>} : memref<16x32xf32, #tpu.memory_space<vmem>>, vector<8x32xf32>,
    return
  }
}

</mosaic_0001>

<bundles_post_ra>
// kernel: tpu_custom_call.1
= control target key start
LH: loop header
LB: loop body
LE: loop exit
PB: predicated region body
PF: predicated region fallthrough
CT: control target
= control target key end

     0   :  { %9 = vsyncpa [#allocation3], 0  ;;  %s2756_s0 = inlined_call_operand.hbm [shape: f32[16,32], index: 0, kind: input, shape index: {}]   ;;  %s2757_s1 = inlined_call_operand.hbm [shape: f32[32,96], index: 1, kind: input, shape index: {}]   ;;  %s2758_s2 = inlined_call_operand.hbm [shape: f32[32,32], index: 2, kind: input, shape index: {}]   ;;  %s2759_s3 = inlined_call_operand.vmem [shape: f32[1,32], index: 3, kind: input, shape index: {}]   ;;  %s2760_s4 = inlined_call_operand.hbm [shape: f32[16,32], index: 4, kind: output, shape index: {}]  }
   0x1   :  { %10 = vsyncpa [#allocation6], 0 }
   0x2   :  { %11 = vsyncpa [#allocation4], 0  ;;  %s2471_s15 = smov [#allocation5]   ;;  %s2472_s17 = smov [#allocation2]  }
   0x3   :  { %s29_s16 = sshll.u32 %s2471_s15, 4  ;;  %s17_s18 = sshll.u32 %s2472_s17, 4  ;;  %s30_s16 = int_to_ptr.vmem [resolvable:$true] %s29_s16  ;;  %s18_s18 = int_to_ptr.vmem [resolvable:$true] %s17_s18 }
   0x4   :  { %s2393_s19 = scalar_lea.vmem %s30_s16, 512  ;;  %p2398_p1 = scmp.lt.s32.totalorder %s30_s16, %s30_s16 }
   0x5   :  { %p2394_p0 = scmp.ne.s32.totalorder %s30_s16, %s2393_s19  ;;  %p2399_p2 = scmp.lt.s32.totalorder %s2393_s19, %s2393_s19 }
   0x7   :  { %p2400_p3 = por %p2399_p2, %p2398_p1 }
   0x9   :  { %p2401_p4 = pnand %p2400_p3, %p2394_p0 }
   0xb   :  { %2404 = shalt.err (!%p2401_p4)
}
   0xc   :  { %s2473_s20 = smov 128   ;;  %s2474_s21 = smov 8  }
   0xd   :  { %35 = dma.hbm_to_vmem [thread:$0]  %s2757_s1, 512, %s30_s16, [#allocation6], %s2473_s20, %s2473_s20, %s2474_s21  }
   0xe   :  { %s2413_s24 = scalar_lea.vmem %s18_s18, 256  ;;  %p2418_p6 = scmp.lt.s32.totalorder %s18_s18, %s18_s18 }
   0xf   :  { %p2414_p5 = scmp.ne.s32.totalorder %s18_s18, %s2413_s24  ;;  %p2419_p7 = scmp.lt.s32.totalorder %s2413_s24, %s2413_s24 }
  0x11   :  { %p2420_p8 = por %p2419_p7, %p2418_p6 }
  0x13   :  { %p2421_p9 = pnand %p2420_p8, %p2414_p5 }
  0x15   :  { %2424 = shalt.err (!%p2421_p9)
}
  0x16   :  { %23 = dma.hbm_to_vmem [thread:$0]  %s2756_s0, 256, %s18_s18, [#allocation3], %s2473_s20, %s2473_s20, %s2474_s21  }
  0x17   :  { %s2475_s27 = smov [#allocation7]  }
  0x18   :  { %s41_s28 = sshll.u32 %s2475_s27, 4  ;;  %s42_s28 = int_to_ptr.vmem [resolvable:$true] %s41_s28 }
  0x19   :  { %s2433_s29 = scalar_lea.vmem %s42_s28, 512  ;;  %p2438_p11 = scmp.lt.s32.totalorder %s42_s28, %s42_s28 }
  0x1a   :  { %p2434_p10 = scmp.ne.s32.totalorder %s42_s28, %s2433_s29  ;;  %p2439_p12 = scmp.lt.s32.totalorder %s2433_s29, %s2433_s29 }
  0x1c   :  { %p2440_p13 = por %p2439_p12, %p2438_p11 }
  0x1e   :  { %p2441_p0 = pnand %p2440_p13, %p2434_p10 }
  0x20   :  { %2444 = shalt.err (!%p2441_p0)
}
  0x21   :  { %47 = dma.hbm_to_vmem [thread:$0]  %s2758_s2, 512, %s42_s28, [#allocation6], %s2473_s20, %s2473_s20, %s2474_s21  }
  0x22   :  { %2465 = dma.done.wait [#allocation3], 256  }
  0x23   :  { %2466 = vsyncadd [#allocation3], 4294967040 }
  0x24   :  { %2467 = dma.done.wait [#allocation6], 1024  }
  0x25   :  { %2468 = vsyncadd [#allocation6], 4294966272  ;;  %vm65_vm0 = vcmask 261120   ;;  %v64_v0 = vld [vmem:[#allocation5 + $0x18] sm:$0xff]  ;;  %v63_v1 = vld [vmem:[#allocation5 + $0x10] sm:$0xff]  ;;  %v2476_v6 = vmov 0.0   ;;  %v147_v11 = vlaneseq }
  0x26   :  { %2203 = vmatprep.subr.mxu0 %v64_v0  ;;  %v59_v2 = vld [vmem:[#allocation2] sm:$0xff]  ;;  %v62_v3 = vld [vmem:[#allocation5 + $0x8] sm:$0xff]  ;;  %v61_v4 = vld [vmem:[#allocation5] sm:$0xff]  ;;  %2214 = vmatprep.subr.mxu1 %v2476_v6  ;;  %vm2477_vm1 = vmmov 0   ;;  %s2478_s0 = smov 64   ;;  %s2479_s2 = smov 96  }
  0x27   :  { %2204 = vmatpush3.msra.mxu0 %v64_v0  ;;  %2211 = vmatprep.mubr.msk.f32.mxu0 %vm65_vm0, %v59_v2  ;;  %v60_v5 = vld [vmem:[#allocation2 + $0x8] sm:$0xff]  ;;  %s2480_s5 = smov 88   ;;  %vm162_vm2 = vcmask 64512   ;;  %v148_v12 = vshrl.u32 %v147_v11, 7  ;;  %v150_v13 = vand.u32 127, %v147_v11  ;;  %s2481_s6 = smov 56  }
  0x28   :  { %2205 = vmatprep.subr.mxu0 %v63_v1  ;;  %2216 = vmatprep.mubr.msk.f32.mxu1 %vm2477_vm1, %v2476_v6  ;;  %s2482_s7 = smov 120   ;;  %v2570_v25 = vld [vmem:[#allocation7] sm:$0xff]  ;;  %s2483_s8 = smov 80   ;;  %v2602_v51 = vld [vmem:[#allocation7 + $0x8] sm:$0xff] }
  0x29   :  { %2206 = vmatpush3.msra.mxu0 %v63_v1  ;;  %vm2558_vm3 = vcmp.le.s32.totalorder %v150_v13, %v148_v12  ;;  %s2484_s9 = smov 112   ;;  %s2485_s10 = smov 48   ;;  %v2625_v1 = vld [vmem:[%s2759_s3] ss:$0 sm:$0xff] }
  0x2a   :  { %2207 = vmatprep.subr.mxu0 %v62_v3  ;;  %s2486_s11 = smov 72   ;;  %s2487_s12 = smov 104  }
  0x2b   :  { %2208 = vmatpush3.msra.mxu0 %v62_v3  ;;  %s2488_s13 = smov 40   ;;  %s2489_s3 = smov [#allocation8]  }
  0x2c   :  { %2209 = vmatprep.subr.mxu0 %v61_v4  ;;  %s2101_s16 = sshll.u32 %s2489_s3, 4  ;;  %s2102_s16 = int_to_ptr.vmem [resolvable:$true] %s2101_s16 }
  0x2d   :  { %2210 = vmatpush3.msra.mxu0 %v61_v4  ;;  %s2445_s17 = scalar_lea.vmem %s2102_s16, 256  ;;  %p2450_p2 = scmp.lt.s32.totalorder %s2102_s16, %s2102_s16 }
  0x2e   :  { %2212 = vmatmul.mubr.msk.f32.vlgmr.msra.gmra.mxu0 %vm65_vm0, %v60_v5  ;;  %2224 = vmatprep.subr.mxu0 %v2476_v6  ;;  %p2446_p1 = scmp.ne.s32.totalorder %s2102_s16, %s2445_s17  ;;  %p2451_p3 = scmp.lt.s32.totalorder %s2445_s17, %s2445_s17 }
  0x2f   :  { %2226 = vmatprep.mubr.msk.f32.mxu0 %vm2477_vm1, %v2476_v6  ;;  %2225 = vmatpush3.msra.mxu0 %v2570_v25 }
  0x30   :  { %2234 = vmatprep.subr.mxu0 %v2476_v6  ;;  %p2452_p4 = por %p2451_p3, %p2450_p2 }
  0x32   :  { %p2453_p5 = pnand %p2452_p4, %p2446_p1 }
  0xee   :  { %v2541_v7 = vpop.f32.mrf.mxu0 }
  0xf0   :  { %v2543_v8 = vpop.f32.mrf.mxu0 }
  0xf1   :  { %250 = vrot.lane.b32.xlu1 %v2543_v8, %s2478_s0  ;;  %160 = vrot.lane.b32.xlu0 %v2543_v8, %s2479_s2 }
  0xf5   :  { %403 = vrot.lane.b32.xlu1 %v2543_v8, %s2480_s5 }
 0x163   :  { %v161_v9 = vpop.permute.xlu0 %160  ;;  %v251_v10 = vpop.permute.xlu1 %250 }
 0x164   :  { %2215 = vmatpush3.xpose.msk.msra.mxu1 %vm162_vm2, %v161_v9  ;;  %v2628_v9 = vld [vmem:[#allocation7 + $0x10] sm:$0xff] }
 0x165   :  { %2219 = vmatprep.subr.mxu1 %v2476_v6 }
 0x167   :  { %2217 = vmatmul.mubr.msk.f32.vlgmr.msra.gmra.mxu1 %vm162_vm2, %v2543_v8  ;;  %v404_v26 = vpop.permute.xlu1 %403 }
 0x168   :  { %2220 = vmatpush3.msra.mxu1 %v251_v10  ;;  %2221 = vmatprep.mubr.msk.f32.mxu1 %vm2477_vm1, %v2476_v6 }
 0x169   :  { %2229 = vmatprep.subr.mxu1 %v2476_v6 }
 0x227   :  { %v233_v14 = vpop.f32.mrf.mxu1 }
 0x228   :  { %v237_v16 = vmul.f32 0.35355338, %v233_v14 }
 0x229   :  { %v2218_v17 = vpop.f32.mrf.mxu1 }
 0x22a   :  { %v238_v18 = vsel %vm2558_vm3, %v237_v16, -inf }
 0x22b   :  { %v239_v19 = vsel %vm162_vm2, %v238_v18, -inf }
 0x22c   :  { %240 = vmax.xlane.f32.xlu0 %v239_v19 }
 0x242   :  { %492 = vrot.lane.b32.xlu0 %v2543_v8, %s2481_s6 }
 0x2b5   :  { %v241_v20 = vpop.xlane.xlu0 %240 }
 0x2b6   :  { %v242_v21 = vsub.f32 %v238_v18, %v241_v20 }
 0x2b8   :  { %v243_v22 = vmul.f32 1.442695, %v242_v21 }
 0x2b9   :  { %v493_v32 = vpop.permute.xlu0 %492 }
 0x2ba   :  { %2353 = vpow2.f32 %v243_v22 }
 0x2c7   :  { %v2354_v23 = vpop.eup %2353 }
 0x2c8   :  { %v245_v24 = vsel %vm162_vm2, %v2354_v23, 0.0 }
 0x2c9   :  { %246 = vadd.xlane.f32.xlu1 %v245_v24 }
 0x2da   :  { %401 = vrot.lane.b32.xlu1 %v2543_v8, %s2482_s7 }
 0x352   :  { %v247_v27 = vpop.xlane.xlu1 %246 }
 0x353   :  { %2355 = vrcp.f32 %v247_v27 }
 0x356   :  { %v402_v30 = vpop.permute.xlu1 %401 }
 0x360   :  { %v2356_v28 = vpop.eup %2355 }
 0x361   :  { %v249_v29 = vmul.f32 %v2356_v28, %v2354_v23 }
 0x363   :  { %2222 = vmatmul.mubr.msk.f32.vlgmr.msra.gmra.mxu1 %vm162_vm2, %v249_v29 }
 0x364   :  { %2230 = vmatpush3.xpose.msk.msra.mxu1 %vm162_vm2, %v404_v26  ;;  %2231 = vmatprep.mubr.msk.f32.mxu1 %vm2477_vm1, %v2476_v6 }
 0x365   :  { %2239 = vmatprep.subr.mxu1 %v2476_v6 }
 0x367   :  { %2232 = vmatmul.mubr.msk.f32.vlgmr.msra.gmra.mxu1 %vm162_vm2, %v402_v30 }
 0x368   :  { %2241 = vmatprep.mubr.msk.f32.mxu1 %vm2477_vm1, %v2476_v6  ;;  %2240 = vmatpush3.msra.mxu1 %v2602_v51 }
 0x369   :  { %2249 = vmatprep.subr.mxu1 %v2476_v6 }
 0x423   :  { %v322_v31 = vpop.f32.mrf.mxu1 }
 0x424   :  { %2227 = vmatmul.mubr.msk.f32.vlgmr.msra.gmra.mxu0 %vm162_vm2, %v322_v31 }
 0x425   :  { %2235 = vmatpush3.msra.mxu0 %v493_v32  ;;  %v2223_v33 = vpop.f32.mrf.mxu1  ;;  %2236 = vmatprep.mubr.msk.f32.mxu0 %vm2477_vm1, %v2476_v6  ;;  %v2654_v32 = vld [vmem:[#allocation7 + $0x18] sm:$0xff] }
 0x426   :  { %2244 = vmatprep.subr.mxu0 %v2476_v6 }
 0x427   :  { %v475_v34 = vpop.f32.mrf.mxu1 }
 0x428   :  { %v479_v35 = vmul.f32 0.35355338, %v475_v34 }
 0x429   :  { %v2233_v36 = vpop.f32.mrf.mxu1 }
 0x42a   :  { %v480_v37 = vsel %vm2558_vm3, %v479_v35, -inf }
 0x42b   :  { %v481_v38 = vsel %vm162_vm2, %v480_v37, -inf }
 0x42c   :  { %482 = vmax.xlane.f32.xlu1 %v481_v38 }
 0x4b5   :  { %v483_v39 = vpop.xlane.xlu1 %482 }
 0x4b6   :  { %v484_v40 = vsub.f32 %v480_v37, %v483_v39 }
 0x4b8   :  { %v485_v41 = vmul.f32 1.442695, %v484_v40 }
 0x4ba   :  { %2357 = vpow2.f32 %v485_v41 }
 0x4c7   :  { %v2358_v42 = vpop.eup %2357 }
 0x4c8   :  { %v487_v43 = vsel %vm162_vm2, %v2358_v42, 0.0 }
 0x4c9   :  { %488 = vadd.xlane.f32.xlu0 %v487_v43 }
 0x4df   :  { %645 = vrot.lane.b32.xlu0 %v2543_v8, %s2483_s8 }
 0x4e3   :  { %643 = vrot.lane.b32.xlu0 %v2543_v8, %s2484_s9 }
 0x4e4   :  { %v396_v44 = vpop.f32.mrf.mxu0 }
 0x4e5   :  { %v400_v2 = vadd.f32 %v2625_v1, %v396_v44 }
 0x4e6   :  { %v2228_v45 = vpop.f32.mrf.mxu0 }
 0x552   :  { %v489_v46 = vpop.xlane.xlu0 %488 }
 0x553   :  { %2359 = vrcp.f32 %v489_v46 }
 0x556   :  { %v646_v48 = vpop.permute.xlu0 %645 }
 0x55a   :  { %v644_v50 = vpop.permute.xlu0 %643 }
 0x560   :  { %v2360_v47 = vpop.eup %2359 }
 0x561   :  { %v491_v49 = vmul.f32 %v2360_v47, %v2358_v42 }
 0x563   :  { %2237 = vmatmul.mubr.msk.f32.vlgmr.msra.gmra.mxu0 %vm162_vm2, %v491_v49 }
 0x564   :  { %2245 = vmatpush3.xpose.msk.msra.mxu0 %vm162_vm2, %v646_v48  ;;  %2246 = vmatprep.mubr.msk.f32.mxu0 %vm2477_vm1, %v2476_v6 }
 0x565   :  { %2254 = vmatprep.subr.mxu0 %v2476_v6 }
 0x567   :  { %2247 = vmatmul.mubr.msk.f32.vlgmr.msra.gmra.mxu0 %vm162_vm2, %v644_v50 }
 0x568   :  { %2256 = vmatprep.mubr.msk.f32.mxu0 %vm2477_vm1, %v2476_v6  ;;  %2255 = vmatpush3.msra.mxu0 %v2628_v9 }
 0x569   :  { %2264 = vmatprep.subr.mxu0 %v2476_v6 }
 0x623   :  { %v564_v52 = vpop.f32.mrf.mxu0 }
 0x624   :  { %2242 = vmatmul.mubr.msk.f32.vlgmr.msra.gmra.mxu1 %vm162_vm2, %v564_v52 }
 0x625   :  { %v2238_v53 = vpop.f32.mrf.mxu0  ;;  %2251 = vmatprep.mubr.msk.f32.mxu1 %vm2477_vm1, %v2476_v6 }
 0x627   :  { %v717_v54 = vpop.f32.mrf.mxu0 }
 0x628   :  { %v721_v55 = vmul.f32 0.35355338, %v717_v54 }
 0x629   :  { %v2248_v56 = vpop.f32.mrf.mxu0 }
 0x62a   :  { %v722_v57 = vsel %vm2558_vm3, %v721_v55, -inf }
 0x62b   :  { %v723_v58 = vsel %vm162_vm2, %v722_v57, -inf }
 0x62c   :  { %724 = vmax.xlane.f32.xlu1 %v723_v58 }
 0x63d   :  { %734 = vrot.lane.b32.xlu1 %v2543_v8, %s2485_s10 }
 0x641   :  { %887 = vrot.lane.b32.xlu1 %v2543_v8, %s2486_s11 }
 0x645   :  { %885 = vrot.lane.b32.xlu1 %v2543_v8, %s2487_s12 }
 0x6b5   :  { %v725_v59 = vpop.xlane.xlu1 %724 }
 0x6b6   :  { %v726_v60 = vsub.f32 %v722_v57, %v725_v59 }
 0x6b8   :  { %v727_v61 = vmul.f32 1.442695, %v726_v60 }
 0x6b9   :  { %v735_v62 = vpop.permute.xlu1 %734 }
 0x6ba   :  { %2361 = vpow2.f32 %v727_v61  ;;  %2250 = vmatpush3.msra.mxu1 %v735_v62 }
 0x6bb   :  { %2259 = vmatprep.subr.mxu1 %v2476_v6 }
 0x6c7   :  { %v2362_v63 = vpop.eup %2361 }
 0x6c8   :  { %v729_v0 = vsel %vm162_vm2, %v2362_v63, 0.0 }
 0x6c9   :  { %730 = vadd.xlane.f32.xlu0 %v729_v0 }
 0x6df   :  { %976 = vrot.lane.b32.xlu0 %v2543_v8, %s2488_s13  ;;  %v888_v8 = vpop.permute.xlu1 %887 }
 0x6e3   :  { %v886_v13 = vpop.permute.xlu1 %885 }
 0x6e4   :  { %v638_v3 = vpop.f32.mrf.mxu1 }
 0x6e5   :  { %v642_v4 = vadd.f32 %v638_v3, %v400_v2 }
 0x6e6   :  { %v2243_v5 = vpop.f32.mrf.mxu1 }
 0x752   :  { %v731_v10 = vpop.xlane.xlu0 %730 }
 0x753   :  { %2363 = vrcp.f32 %v731_v10 }
 0x756   :  { %v977_v16 = vpop.permute.xlu0 %976 }
 0x760   :  { %v2364_v11 = vpop.eup %2363 }
 0x761   :  { %v733_v12 = vmul.f32 %v2364_v11, %v2362_v63 }
 0x763   :  { %2252 = vmatmul.mubr.msk.f32.vlgmr.msra.gmra.mxu1 %vm162_vm2, %v733_v12 }
 0x764   :  { %2260 = vmatpush3.xpose.msk.msra.mxu1 %vm162_vm2, %v888_v8  ;;  %2261 = vmatprep.mubr.msk.f32.mxu1 %vm2477_vm1, %v2476_v6 }
 0x765   :  { %2269 = vmatprep.subr.mxu1 %v2476_v6 }
 0x767   :  { %2262 = vmatmul.mubr.msk.f32.vlgmr.msra.gmra.mxu1 %vm162_vm2, %v886_v13 }
 0x768   :  { %2271 = vmatprep.mubr.msk.f32.mxu1 %vm2477_vm1, %v2476_v6  ;;  %2270 = vmatpush3.msra.mxu1 %v2654_v32 }
 0x769   :  { %2279 = vmatprep.subr.mxu1 %v2476_v6 }
 0x823   :  { %v806_v14 = vpop.f32.mrf.mxu1 }
 0x824   :  { %2257 = vmatmul.mubr.msk.f32.vlgmr.msra.gmra.mxu0 %vm162_vm2, %v806_v14 }
 0x825   :  { %2265 = vmatpush3.msra.mxu0 %v977_v16  ;;  %v2253_v17 = vpop.f32.mrf.mxu1  ;;  %2266 = vmatprep.mubr.msk.f32.mxu0 %vm2477_vm1, %v2476_v6 }
 0x826   :  { %2274 = vmatprep.subr.mxu0 %v2476_v6 }
 0x827   :  { %v959_v18 = vpop.f32.mrf.mxu1 }
 0x828   :  { %v963_v19 = vmul.f32 0.35355338, %v959_v18 }
 0x829   :  { %v2263_v20 = vpop.f32.mrf.mxu1 }
 0x82a   :  { %v964_v21 = vsel %vm2558_vm3, %v963_v19, -inf }
 0x82b   :  { %v965_v22 = vsel %vm162_vm2, %v964_v21, -inf }
 0x82c   :  { %966 = vmax.xlane.f32.xlu1 %v965_v22 }
 0x83d   :  { %1218 = vrot.lane.b32.xlu1 %v2541_v7, %s2478_s0 }
 0x841   :  { %1371 = vrot.lane.b32.xlu1 %v2541_v7, %s2480_s5 }
 0x8b5   :  { %v967_v23 = vpop.xlane.xlu1 %966 }
 0x8b6   :  { %v968_v24 = vsub.f32 %v964_v21, %v967_v23 }
 0x8b8   :  { %v969_v26 = vmul.f32 1.442695, %v968_v24 }
 0x8b9   :  { %v1219_v38 = vpop.permute.xlu1 %1218 }
 0x8ba   :  { %2365 = vpow2.f32 %v969_v26 }
 0x8bd   :  { %v1372_v53 = vpop.permute.xlu1 %1371 }
 0x8c7   :  { %v2366_v27 = vpop.eup %2365 }
 0x8c8   :  { %v971_v28 = vsel %vm162_vm2, %v2366_v27, 0.0 }
 0x8c9   :  { %972 = vadd.xlane.f32.xlu0 %v971_v28 }
 0x8df   :  { %1129 = vrot.lane.b32.xlu0 %v2541_v7, %s2479_s2 }
 0x8e4   :  { %v880_v29 = vpop.f32.mrf.mxu0 }
 0x8e5   :  { %v884_v30 = vadd.f32 %v880_v29, %v642_v4 }
 0x8e6   :  { %v2258_v31 = vpop.f32.mrf.mxu0 }
 0x952   :  { %v973_v33 = vpop.xlane.xlu0 %972 }
 0x953   :  { %2367 = vrcp.f32 %v973_v33 }
 0x956   :  { %v1130_v36 = vpop.permute.xlu0 %1129 }
 0x960   :  { %v2368_v34 = vpop.eup %2367 }
 0x961   :  { %v975_v35 = vmul.f32 %v2368_v34, %v2366_v27 }
 0x963   :  { %2267 = vmatmul.mubr.msk.f32.vlgmr.msra.gmra.mxu0 %vm162_vm2, %v975_v35 }
 0x964   :  { %2275 = vmatpush3.xpose.msk.msra.mxu0 %vm162_vm2, %v1130_v36  ;;  %2276 = vmatprep.mubr.msk.f32.mxu0 %vm2477_vm1, %v2476_v6 }
 0x965   :  { %2284 = vmatprep.subr.mxu0 %v2476_v6 }
 0x967   :  { %2277 = vmatmul.mubr.msk.f32.vlgmr.msra.gmra.mxu0 %vm162_vm2, %v2541_v7 }
 0x968   :  { %2285 = vmatpush3.msra.mxu0 %v2570_v25  ;;  %2286 = vmatprep.mubr.msk.f32.mxu0 %vm2477_vm1, %v2476_v6 }
 0x969   :  { %2294 = vmatprep.subr.mxu0 %v2476_v6 }
 0xa23   :  { %v1048_v37 = vpop.f32.mrf.mxu0 }
 0xa24   :  { %2272 = vmatmul.mubr.msk.f32.vlgmr.msra.gmra.mxu1 %vm162_vm2, %v1048_v37 }
 0xa25   :  { %2280 = vmatpush3.msra.mxu1 %v1219_v38  ;;  %v2268_v39 = vpop.f32.mrf.mxu0  ;;  %2281 = vmatprep.mubr.msk.f32.mxu1 %vm2477_vm1, %v2476_v6 }
 0xa26   :  { %2289 = vmatprep.subr.mxu1 %v2476_v6 }
 0xa27   :  { %v1201_v40 = vpop.f32.mrf.mxu0 }
 0xa28   :  { %v1205_v41 = vmul.f32 0.35355338, %v1201_v40 }
 0xa29   :  { %v2278_v42 = vpop.f32.mrf.mxu0 }
 0xa2a   :  { %v1206_v25 = vsel %vm2558_vm3, %v1205_v41, -inf }
 0xa2b   :  { %v1207_v43 = vsel %vm162_vm2, %v1206_v25, -inf }
 0xa2c   :  { %1208 = vmax.xlane.f32.xlu0 %v1207_v43 }
 0xa42   :  { %1460 = vrot.lane.b32.xlu0 %v2541_v7, %s2481_s6 }
 0xab5   :  { %v1209_v44 = vpop.xlane.xlu0 %1208 }
 0xab6   :  { %v1210_v45 = vsub.f32 %v1206_v25, %v1209_v44 }
 0xab8   :  { %v1211_v46 = vmul.f32 1.442695, %v1210_v45 }
 0xab9   :  { %v1461_v59 = vpop.permute.xlu0 %1460 }
 0xaba   :  { %2369 = vpow2.f32 %v1211_v46 }
 0xac7   :  { %v2370_v47 = vpop.eup %2369 }
 0xac8   :  { %v1213_v48 = vsel %vm162_vm2, %v2370_v47, 0.0 }
 0xac9   :  { %1214 = vadd.xlane.f32.xlu1 %v1213_v48 }
 0xada   :  { %1369 = vrot.lane.b32.xlu1 %v2541_v7, %s2482_s7 }
 0xae4   :  { %v1122_v49 = vpop.f32.mrf.mxu1 }
 0xae5   :  { %v1126_v50 = vadd.f32 %v1122_v49, %v884_v30 }
 0xae6   :  { %v2273_v52 = vpop.f32.mrf.mxu1 }
 0xae7   :  { %1127 = vst.msk [vmem:[#allocation8] sm:$0xff] %vm65_vm0, %v1126_v50 }
 0xb52   :  { %v1215_v54 = vpop.xlane.xlu1 %1214 }
 0xb53   :  { %2371 = vrcp.f32 %v1215_v54 }
 0xb56   :  { %v1370_v57 = vpop.permute.xlu1 %1369 }
 0xb60   :  { %v2372_v55 = vpop.eup %2371 }
 0xb61   :  { %v1217_v56 = vmul.f32 %v2372_v55, %v2370_v47 }
 0xb63   :  { %2282 = vmatmul.mubr.msk.f32.vlgmr.msra.gmra.mxu1 %vm162_vm2, %v1217_v56 }
 0xb64   :  { %2290 = vmatpush3.xpose.msk.msra.mxu1 %vm162_vm2, %v1372_v53  ;;  %2291 = vmatprep.mubr.msk.f32.mxu1 %vm2477_vm1, %v2476_v6 }
 0xb65   :  { %2299 = vmatprep.subr.mxu1 %v2476_v6 }
 0xb67   :  { %2292 = vmatmul.mubr.msk.f32.vlgmr.msra.gmra.mxu1 %vm162_vm2, %v1370_v57 }
 0xb68   :  { %2300 = vmatpush3.msra.mxu1 %v2602_v51  ;;  %2301 = vmatprep.mubr.msk.f32.mxu1 %vm2477_vm1, %v2476_v6 }
 0xb69   :  { %2309 = vmatprep.subr.mxu1 %v2476_v6 }
 0xc23   :  { %v1290_v58 = vpop.f32.mrf.mxu1 }
 0xc24   :  { %2287 = vmatmul.mubr.msk.f32.vlgmr.msra.gmra.mxu0 %vm162_vm2, %v1290_v58 }
 0xc25   :  { %2295 = vmatpush3.msra.mxu0 %v1461_v59  ;;  %v2283_v60 = vpop.f32.mrf.mxu1  ;;  %2296 = vmatprep.mubr.msk.f32.mxu0 %vm2477_vm1, %v2476_v6 }
 0xc26   :  { %2304 = vmatprep.subr.mxu0 %v2476_v6 }
 0xc27   :  { %v1443_v61 = vpop.f32.mrf.mxu1 }
 0xc28   :  { %v1447_v62 = vmul.f32 0.35355338, %v1443_v61 }
 0xc29   :  { %v2293_v63 = vpop.f32.mrf.mxu1 }
 0xc2a   :  { %v1448_v51 = vsel %vm2558_vm3, %v1447_v62, -inf }
 0xc2b   :  { %v1449_v0 = vsel %vm162_vm2, %v1448_v51, -inf }
 0xc2c   :  { %1450 = vmax.xlane.f32.xlu1 %v1449_v0 }
 0xc3d   :  { %1702 = vrot.lane.b32.xlu1 %v2541_v7, %s2485_s10 }
 0xc41   :  { %1855 = vrot.lane.b32.xlu1 %v2541_v7, %s2486_s11 }
 0xcb5   :  { %v1451_v2 = vpop.xlane.xlu1 %1450 }
 0xcb6   :  { %v1452_v3 = vsub.f32 %v1448_v51, %v1451_v2 }
 0xcb8   :  { %v1453_v4 = vmul.f32 1.442695, %v1452_v3 }
 0xcb9   :  { %v1703_v19 = vpop.permute.xlu1 %1702 }
 0xcba   :  { %2373 = vpow2.f32 %v1453_v4 }
 0xcbd   :  { %v1856_v36 = vpop.permute.xlu1 %1855 }
 0xcc7   :  { %v2374_v5 = vpop.eup %2373 }
 0xcc8   :  { %v1455_v10 = vsel %vm162_vm2, %v2374_v5, 0.0 }
 0xcc9   :  { %1456 = vadd.xlane.f32.xlu0 %v1455_v10 }
 0xcdf   :  { %1613 = vrot.lane.b32.xlu0 %v2541_v7, %s2483_s8 }
 0xce3   :  { %1611 = vrot.lane.b32.xlu0 %v2541_v7, %s2484_s9 }
 0xce4   :  { %v1364_v11 = vpop.f32.mrf.mxu0 }
 0xce5   :  { %v1368_v31 = vadd.f32 %v2625_v1, %v1364_v11 }
 0xce6   :  { %v2288_v8 = vpop.f32.mrf.mxu0 }
 0xd52   :  { %v1457_v12 = vpop.xlane.xlu0 %1456 }
 0xd53   :  { %2375 = vrcp.f32 %v1457_v12 }
 0xd56   :  { %v1614_v14 = vpop.permute.xlu0 %1613 }
 0xd5a   :  { %v1612_v17 = vpop.permute.xlu0 %1611 }
 0xd60   :  { %v2376_v13 = vpop.eup %2375 }
 0xd61   :  { %v1459_v16 = vmul.f32 %v2376_v13, %v2374_v5 }
 0xd63   :  { %2297 = vmatmul.mubr.msk.f32.vlgmr.msra.gmra.mxu0 %vm162_vm2, %v1459_v16 }
 0xd64   :  { %2305 = vmatpush3.xpose.msk.msra.mxu0 %vm162_vm2, %v1614_v14  ;;  %2306 = vmatprep.mubr.msk.f32.mxu0 %vm2477_vm1, %v2476_v6 }
 0xd65   :  { %2314 = vmatprep.subr.mxu0 %v2476_v6 }
 0xd67   :  { %2307 = vmatmul.mubr.msk.f32.vlgmr.msra.gmra.mxu0 %vm162_vm2, %v1612_v17 }
 0xd68   :  { %2315 = vmatpush3.msra.mxu0 %v2628_v9  ;;  %2316 = vmatprep.mubr.msk.f32.mxu0 %vm2477_vm1, %v2476_v6 }
 0xd69   :  { %2324 = vmatprep.subr.mxu0 %v2476_v6 }
 0xe23   :  { %v1532_v18 = vpop.f32.mrf.mxu0 }
 0xe24   :  { %2302 = vmatmul.mubr.msk.f32.vlgmr.msra.gmra.mxu1 %vm162_vm2, %v1532_v18 }
 0xe25   :  { %2310 = vmatpush3.msra.mxu1 %v1703_v19  ;;  %v2298_v20 = vpop.f32.mrf.mxu0  ;;  %2311 = vmatprep.mubr.msk.f32.mxu1 %vm2477_vm1, %v2476_v6 }
 0xe26   :  { %2319 = vmatprep.subr.mxu1 %v2476_v6 }
 0xe27   :  { %v1685_v21 = vpop.f32.mrf.mxu0 }
 0xe28   :  { %v1689_v22 = vmul.f32 0.35355338, %v1685_v21 }
 0xe29   :  { %v2308_v23 = vpop.f32.mrf.mxu0 }
 0xe2a   :  { %v1690_v9 = vsel %vm2558_vm3, %v1689_v22, -inf }
 0xe2b   :  { %v1691_v24 = vsel %vm162_vm2, %v1690_v9, -inf }
 0xe2c   :  { %1692 = vmax.xlane.f32.xlu0 %v1691_v24 }
 0xeb5   :  { %v1693_v26 = vpop.xlane.xlu0 %1692 }
 0xeb6   :  { %v1694_v27 = vsub.f32 %v1690_v9, %v1693_v26 }
 0xeb8   :  { %v1695_v28 = vmul.f32 1.442695, %v1694_v27 }
 0xeba   :  { %2377 = vpow2.f32 %v1695_v28 }
 0xec7   :  { %v2378_v29 = vpop.eup %2377 }
 0xec8   :  { %v1697_v30 = vsel %vm162_vm2, %v2378_v29, 0.0 }
 0xec9   :  { %1698 = vadd.xlane.f32.xlu1 %v1697_v30 }
 0xeda   :  { %1853 = vrot.lane.b32.xlu1 %v2541_v7, %s2487_s12 }
 0xee4   :  { %v1606_v33 = vpop.f32.mrf.mxu1 }
 0xee5   :  { %v1610_v34 = vadd.f32 %v1606_v33, %v1368_v31 }
 0xee6   :  { %v2303_v35 = vpop.f32.mrf.mxu1 }
 0xf52   :  { %v1699_v37 = vpop.xlane.xlu1 %1698 }
 0xf53   :  { %2379 = vrcp.f32 %v1699_v37 }
 0xf56   :  { %v1854_v40 = vpop.permute.xlu1 %1853 }
 0xf60   :  { %v2380_v38 = vpop.eup %2379 }
 0xf61   :  { %v1701_v39 = vmul.f32 %v2380_v38, %v2378_v29 }
 0xf63   :  { %2312 = vmatmul.mubr.msk.f32.vlgmr.msra.gmra.mxu1 %vm162_vm2, %v1701_v39 }
 0xf64   :  { %2320 = vmatpush3.xpose.msk.msra.mxu1 %vm162_vm2, %v1856_v36  ;;  %2321 = vmatprep.mubr.msk.f32.mxu1 %vm2477_vm1, %v2476_v6 }
 0xf65   :  { %2329 = vmatprep.subr.mxu1 %v2476_v6 }
 0xf67   :  { %2322 = vmatmul.mubr.msk.f32.vlgmr.msra.gmra.mxu1 %vm162_vm2, %v1854_v40 }
 0xf68   :  { %2330 = vmatpush3.msra.mxu1 %v2654_v32  ;;  %2331 = vmatprep.mubr.msk.f32.mxu1 %vm2477_vm1, %v2476_v6 }
0x1023   :  { %v1774_v1 = vpop.f32.mrf.mxu1 }
0x1024   :  { %2317 = vmatmul.mubr.msk.f32.vlgmr.msra.gmra.mxu0 %vm162_vm2, %v1774_v1 }
0x1025   :  { %v2313_v41 = vpop.f32.mrf.mxu1  ;;  %2326 = vmatprep.mubr.msk.f32.mxu0 %vm2477_vm1, %v2476_v6 }
0x1027   :  { %v1927_v42 = vpop.f32.mrf.mxu1 }
0x1028   :  { %v1931_v25 = vmul.f32 0.35355338, %v1927_v42 }
0x1029   :  { %v2323_v43 = vpop.f32.mrf.mxu1 }
0x102a   :  { %v1932_v44 = vsel %vm2558_vm3, %v1931_v25, -inf }
0x102b   :  { %v1933_v45 = vsel %vm162_vm2, %v1932_v44, -inf }
0x102c   :  { %1934 = vmax.xlane.f32.xlu1 %v1933_v45 }
0x10b5   :  { %v1935_v32 = vpop.xlane.xlu1 %1934 }
0x10b6   :  { %v1936_v46 = vsub.f32 %v1932_v44, %v1935_v32 }
0x10b8   :  { %v1937_v47 = vmul.f32 1.442695, %v1936_v46 }
0x10ba   :  { %2381 = vpow2.f32 %v1937_v47 }
0x10c7   :  { %v2382_v48 = vpop.eup %2381 }
0x10c8   :  { %v1939_v49 = vsel %vm162_vm2, %v2382_v48, 0.0 }
0x10c9   :  { %1940 = vadd.xlane.f32.xlu0 %v1939_v49 }
0x10df   :  { %1944 = vrot.lane.b32.xlu0 %v2541_v7, %s2488_s13 }
0x10e4   :  { %v1848_v6 = vpop.f32.mrf.mxu0 }
0x10e5   :  { %v1852_v50 = vadd.f32 %v1848_v6, %v1610_v34 }
0x10e6   :  { %v2318_v52 = vpop.f32.mrf.mxu0 }
0x1152   :  { %v1941_v53 = vpop.xlane.xlu0 %1940 }
0x1153   :  { %2383 = vrcp.f32 %v1941_v53 }
0x1156   :  { %v1945_v15 = vpop.permute.xlu0 %1944 }
0x1157   :  { %2325 = vmatpush3.msra.mxu0 %v1945_v15 }
0x1160   :  { %v2384_v54 = vpop.eup %2383 }
0x1161   :  { %v1943_v55 = vmul.f32 %v2384_v54, %v2382_v48 }
0x1163   :  { %2327 = vmatmul.mubr.msk.f32.vlgmr.msra.gmra.mxu0 %vm162_vm2, %v1943_v55 }
0x1223   :  { %v2016_v56 = vpop.f32.mrf.mxu0 }
0x1224   :  { %2332 = vmatmul.mubr.msk.f32.vlgmr.msra.gmra.mxu1 %vm162_vm2, %v2016_v56 }
0x1225   :  { %v2328_v57 = vpop.f32.mrf.mxu0 }
0x12e4   :  { %v2090_v58 = vpop.f32.mrf.mxu1 }
0x12e5   :  { %v2094_v59 = vadd.f32 %v2090_v58, %v1852_v50 }
0x12e6   :  { %v2333_v7 = vpop.f32.mrf.mxu1 }
0x12e7   :  { %2095 = vst.msk [vmem:[#allocation8 + $0x8] sm:$0xff] %vm65_vm0, %v2094_v59 }
0x12e8   :  { %2456 = shalt.err (!%p2453_p5)
}
0x12e9   :  { %2107 = dma.vmem_to_hbm [thread:$0]  %s2102_s16, 256, %s2760_s4, [#allocation4], %s2473_s20, %s2473_s20, %s2474_s21  }
0x12ea   :  { %2469 = dma.done.wait [#allocation4], 256  }
0x12eb   :  { %2470 = vsyncadd [#allocation4], 4294967040 }
0x12ec   :  { %2111 = vsyncpa [#allocation3], 1 }
0x12ed   :  { %2112 = vsyncpa [#allocation6], 1 }
0x12ee   :  { %2113 = vsyncpa [#allocation4], 1 }

</bundles_post_ra>
